<compile_context>
chip_gen: v5e
topology: v5e:2x2
jax: 0.10.0
libtpu: 0.0.40
codegen_flags: <defaults>
</compile_context>

<pallas_src>
import jax
import jax.numpy as jnp
from jax.experimental import pallas as pl
from jax.experimental.pallas import tpu as pltpu

LANE = 128


def _round_up(x, m):
    return ((x + m - 1) // m) * m


def _tpu_vmem_capacity_bytes():
    """Physical VMEM per TensorCore (128 MiB on v5e/v6e, 64 MiB on v7x)."""
    try:
        cap = getattr(pltpu.get_tpu_info(), "vmem_capacity_bytes", None)
        if cap:
            return int(cap)
    except Exception:
        pass
    return 64 * 1024 * 1024  # conservative fallback = v7x per-TC VMEM


def _pick_batch_tile(B, S, Ap, Hp, mat_bytes, budget_bytes):
    """Largest batch tile (multiple of 8 sublanes) fitting the VMEM budget.

    Capped so the "parallel" batch axis keeps >= 2 grid steps (both v7x
    TensorCores get work).  Boundary blocks (B % tb != 0) are benign: all
    math is row-wise and out-of-range rows are never written back.
    """
    if B <= 8:
        return B  # single full-batch block (block dim == full array dim is legal)
    per_row = (2 * S * Ap * mat_bytes      # double-buffered annotation block
               + 2 * Hp * mat_bytes        # double-buffered hidden block
               + 2 * S * Hp * 4            # f32 a_proj / z intermediates
               + 2 * (Ap + S) * 4)         # double-buffered ctx / w outputs
    tb = max(8, (budget_bytes // per_row) // 8 * 8)
    tb = min(tb, _round_up(pl.cdiv(B, 2), 8))   # nb >= 2 -> megacore sharding
    tb = min(tb, 512)                           # per-step amortization flattens out
    return int(tb)


def attention_kernel(h_ref, ann_ref, wh_ref, wa_ref, b1_ref, w2_ref,
                     ctx_ref, w_ref):
    # h_ref:  (TB, Hp)   [matmul dtype]     ann_ref: (TB, S, Ap) [matmul dtype]
    # wh_ref: (Hp, Hp) = Wh^T               wa_ref:  (Ap, Hp)   = Wa^T
    # b1_ref: (1, Hp) f32                   w2_ref:  (1, Hp) f32
    # ctx_ref:(TB, Ap) f32                  w_ref:   (TB, S) f32
    h = h_ref[...]
    ann = ann_ref[...]
    TB, S, Ap = ann.shape
    Hp = h.shape[1]

    # First linear as two MXU matmuls (no concat); f32 accumulate.
    # Fold b1 into the small (TB, Hp) projection BEFORE the (TB, S, Hp)
    # broadcast so it costs TB*Hp adds, not TB*S*Hp.
    h_proj = jnp.dot(h, wh_ref[...], preferred_element_type=jnp.float32)
    h_proj = h_proj + b1_ref[...]                                       # (TB, Hp)

    # Ap / Hp are 128-aligned, so these reshapes only merge/split leading
    # dims (layout no-ops).
    a_proj = jnp.dot(ann.reshape(TB * S, Ap), wa_ref[...],
                     preferred_element_type=jnp.float32).reshape(TB, S, Hp)

    z = jnp.tanh(h_proj[:, None, :] + a_proj)                           # (TB, S, Hp) f32

    # Second linear H->1: VPU broadcast-mul + lane reduction (avoids an N=1
    # MXU matmul).  b2 is dropped: softmax is shift invariant.
    e = jnp.sum(z * w2_ref[...][None, :, :], axis=-1)                   # (TB, S)

    # Softmax over the sequence axis (exact reciprocal: approx buys nothing
    # here and the exact one keeps the outputs bit-tight vs. the reference).
    m = jnp.max(e, axis=1, keepdims=True)
    p = jnp.exp(e - m)
    inv = pl.reciprocal(jnp.sum(p, axis=1, keepdims=True), approx=False)
    w = p * inv                                                         # (TB, S) f32
    w_ref[...] = w

    # context = w @ annotations, kept on the VPU (mul + sublane reduce) in
    # f32; padded A lanes are zero and sliced off in the wrapper.
    ctx_ref[...] = jnp.sum(w[:, :, None] * ann.astype(jnp.float32), axis=1)


def attention_forward(prev_hidden_state, annotations, params,
                      matmul_dtype=jnp.bfloat16):
    """Runs the Pallas attention kernel.

    matmul_dtype: dtype for the MXU operands (h, annotations, Wh^T, Wa^T).
    bf16 halves HBM traffic on the dominant (annotations) stream; elementwise
    math stays f32.  In production the annotations / weights should already
    arrive in this dtype (and 128-aligned) so the casts/pads below are no-ops.
    """
    wh_p, wa_p, b1_p, w2_p = params
    B, S, A = annotations.shape
    H = prev_hidden_state.shape[1]
    Hp = wh_p.shape[0]
    Ap = wa_p.shape[0]

    # Pad feature dims to 128 lanes only when they are not already aligned.
    h_in = prev_hidden_state
    if Hp != H:
        h_in = jnp.pad(h_in, ((0, 0), (0, Hp - H)))
    ann_in = annotations
    if Ap != A:
        ann_in = jnp.pad(ann_in, ((0, 0), (0, 0), (0, Ap - A)))
    h_in = h_in.astype(matmul_dtype)
    ann_in = ann_in.astype(matmul_dtype)
    wh_in = wh_p.astype(matmul_dtype)
    wa_in = wa_p.astype(matmul_dtype)

    # Tile the batch against this chip's VMEM (v7x: 64 MiB -> smaller tile).
    mat_bytes = jnp.dtype(matmul_dtype).itemsize
    cap = _tpu_vmem_capacity_bytes()
    weight_bytes = (Hp * Hp + Ap * Hp) * mat_bytes + 2 * Hp * 4
    budget = max(int(cap * 0.6) - weight_bytes, 4 << 20)
    tb = _pick_batch_tile(B, S, Ap, Hp, mat_bytes, budget)
    nb = pl.cdiv(B, tb)
    vmem_limit = int(cap * 0.75)

    ctx_pad, w_flat = pl.pallas_call(
        attention_kernel,
        out_shape=(jax.ShapeDtypeStruct((B, Ap), jnp.float32),
                   jax.ShapeDtypeStruct((B, S), jnp.float32)),
        grid=(nb,),
        in_specs=[
            pl.BlockSpec((tb, Hp), lambda b: (b, 0)),
            pl.BlockSpec((tb, S, Ap), lambda b: (b, 0, 0)),
            pl.BlockSpec((Hp, Hp), lambda b: (0, 0)),   # weights stay VMEM-resident
            pl.BlockSpec((Ap, Hp), lambda b: (0, 0)),
            pl.BlockSpec((1, Hp), lambda b: (0, 0)),
            pl.BlockSpec((1, Hp), lambda b: (0, 0)),
        ],
        out_specs=(
            pl.BlockSpec((tb, Ap), lambda b: (b, 0)),
            pl.BlockSpec((tb, S), lambda b: (b, 0)),
        ),
        compiler_params=pltpu.CompilerParams(
            dimension_semantics=("parallel",),
            vmem_limit_bytes=vmem_limit),
    )(h_in, ann_in, wh_in, wa_in, b1_p, w2_p)

    # Layout plumbing back to the PyTorch output shapes.
    context = ctx_pad[:, :A].reshape(B, 1, A)
    attn_weights = w_flat.reshape(B, 1, S)
    return context, attn_weights


def init_params(key, hidden_size, annotation_size):
    """Deterministic synthetic init matching nn.Linear shapes.

    Kernel params are stored split / transposed / lane-padded in f32 (the
    wrapper casts to the MXU dtype).  b2 is intentionally excluded from the
    kernel params: softmax shift-invariance makes it a no-op on both outputs.
    """
    k1, k2, k3, k4 = jax.random.split(key, 4)
    in_dim = hidden_size + annotation_size
    # Linear(hidden+annot -> hidden): weight (H, H+A), bias (H,)
    bound1 = 1.0 / jnp.sqrt(in_dim)
    W1 = jax.random.uniform(k1, (hidden_size, in_dim), jnp.float32, -bound1, bound1)
    b1 = jax.random.uniform(k2, (hidden_size,), jnp.float32, -bound1, bound1)
    # Linear(hidden -> 1): weight (1, H), bias (1,)
    bound2 = 1.0 / jnp.sqrt(hidden_size)
    W2 = jax.random.uniform(k3, (1, hidden_size), jnp.float32, -bound2, bound2)
    b2 = jax.random.uniform(k4, (1,), jnp.float32, -bound2, bound2)

    H_pad = _round_up(hidden_size, LANE)
    A_pad = _round_up(annotation_size, LANE)

    # Split W1 into hidden / annotation parts, transpose, zero-pad to 128 lanes.
    wh_t = W1[:, :hidden_size].T               # (H, H)
    wa_t = W1[:, hidden_size:].T               # (A, H)
    wh_p = jnp.zeros((H_pad, H_pad), jnp.float32).at[:hidden_size, :hidden_size].set(wh_t)
    wa_p = jnp.zeros((A_pad, H_pad), jnp.float32).at[:annotation_size, :hidden_size].set(wa_t)
    b1_p = jnp.zeros((1, H_pad), jnp.float32).at[:, :hidden_size].set(b1)
    w2_p = jnp.zeros((1, H_pad), jnp.float32).at[:, :hidden_size].set(W2[0])

    return (wh_p, wa_p, b1_p, w2_p), (W1, b1, W2, b2)


def reference_forward(prev_hidden_state, annotations, raw_params):
    """Pure-JAX reference mirroring the PyTorch module exactly (keeps b2)."""
    W1, b1, W2, b2 = raw_params
    B, S, A = annotations.shape
    h_rep = jnp.broadcast_to(prev_hidden_state[:, None, :],
                             (B, S, prev_hidden_state.shape[1]))
    concat = jnp.concatenate([h_rep, annotations], axis=2)           # (B, S, H+A)
    z = jnp.tanh(concat @ W1.T + b1)                                  # (B, S, H)
    e = (z @ W2.T + b2)[..., 0]                                       # (B, S)
    w = jax.nn.softmax(e, axis=1)[:, None, :]                         # (B, 1, S)
    ctx = jnp.einsum('bos,bsa->boa', w, annotations)                  # (B, 1, A)
    return ctx, w


if __name__ == "__main__":
    batch, seq, hidden, annot = 2, 8, 32, 16

    key = jax.random.PRNGKey(0)
    k_h, k_a, k_p = jax.random.split(key, 3)
    prev_hidden_state = jax.random.normal(k_h, (batch, hidden), jnp.float32)
    annotations = jax.random.normal(k_a, (batch, seq, annot), jnp.float32)

    kernel_params, raw_params = init_params(k_p, hidden, annot)
    ref_ctx, ref_w = reference_forward(prev_hidden_state, annotations, raw_params)

    # Exact (f32) path: should match the reference tightly now that the
    # softmax uses the exact reciprocal.
    ctx32, w32 = attention_forward(prev_hidden_state, annotations,
                                   kernel_params, matmul_dtype=jnp.float32)
    ctx32 = jax.block_until_ready(ctx32)
    w32 = jax.block_until_ready(w32)
    assert ctx32.shape == (batch, 1, annot)
    assert w32.shape == (batch, 1, seq)
    assert jnp.allclose(ctx32, ref_ctx, atol=1e-4, rtol=1e-4)
    assert jnp.allclose(w32, ref_w, atol=1e-4, rtol=1e-4)

    # bf16-MXU path (recommended perf config on v5e/v6e/v7x): bf16 operand
    # rounding only, f32 accumulate + f32 elementwise.
    ctx16, w16 = attention_forward(prev_hidden_state, annotations,
                                   kernel_params, matmul_dtype=jnp.bfloat16)
    ctx16 = jax.block_until_ready(ctx16)
    w16 = jax.block_until_ready(w16)
    assert jnp.allclose(ctx16, ref_ctx, atol=2e-2, rtol=2e-2)
    assert jnp.allclose(w16, ref_w, atol=2e-2, rtol=2e-2)

    print("KERNEL_OK")
</pallas_src>

<mosaic_0001>
module attributes {stable_mosaic.version = 11 : i64} {
  func.func @attention_kernel(%arg0: i32, %arg1: memref<2x128xf32, #tpu.memory_space<vmem>>, %arg2: memref<2x8x128xf32, #tpu.memory_space<vmem>>, %arg3: memref<128x128xf32, #tpu.memory_space<vmem>>, %arg4: memref<128x128xf32, #tpu.memory_space<vmem>>, %arg5: memref<1x128xf32, #tpu.memory_space<vmem>>, %arg6: memref<1x128xf32, #tpu.memory_space<vmem>>, %arg7: memref<2x128xf32, #tpu.memory_space<vmem>>, %arg8: memref<2x8xf32, #tpu.memory_space<vmem>>) attributes {dimension_semantics = [#tpu.dimension_semantics<parallel>], iteration_bounds = array<i64: 1>, scalar_prefetch = 0 : i64, scratch_operands = 0 : i64, tpu.core_type = #tpu.core_type<tc>, window_params = [{transform_indices = @transform_0, window_bounds = array<i64: 2, 128>}, {transform_indices = @transform_1, window_bounds = array<i64: 2, 8, 128>}, {pipeline_mode = #tpu.pipeline_mode<synchronous>, transform_indices = @transform_2, window_bounds = array<i64: 128, 128>}, {pipeline_mode = #tpu.pipeline_mode<synchronous>, transform_indices = @transform_3, window_bounds = array<i64: 128, 128>}, {pipeline_mode = #tpu.pipeline_mode<synchronous>, transform_indices = @transform_4, window_bounds = array<i64: 1, 128>}, {pipeline_mode = #tpu.pipeline_mode<synchronous>, transform_indices = @transform_5, window_bounds = array<i64: 1, 128>}, {transform_indices = @transform_6, window_bounds = array<i64: 2, 128>}, {transform_indices = @transform_7, window_bounds = array<i64: 2, 8>}]} {
    %c0 = arith.constant 0 : index
    %c0_0 = arith.constant 0 : index
    %0 = vector.load %arg1[%c0, %c0_0] : memref<2x128xf32, #tpu.memory_space<vmem>>, vector<2x128xf32>
    %c0_1 = arith.constant 0 : index
    %c0_2 = arith.constant 0 : index
    %c0_3 = arith.constant 0 : index
    %1 = vector.load %arg2[%c0_1, %c0_2, %c0_3] : memref<2x8x128xf32, #tpu.memory_space<vmem>>, vector<2x8x128xf32>
    %c0_4 = arith.constant 0 : index
    %c0_5 = arith.constant 0 : index
    %2 = vector.load %arg3[%c0_4, %c0_5] : memref<128x128xf32, #tpu.memory_space<vmem>>, vector<128x128xf32>
    %cst = arith.constant dense<0.000000e+00> : vector<2x128xf32>
    %3 = tpu.matmul %0, %2, %cst {dimension_numbers = #tpu.dot_dimension_numbers<[1], [0], [0], [1], [0, 0, 1, 1], [], []>} : vector<2x128xf32>, vector<128x128xf32>, vector<2x128xf32> -> vector<2x128xf32>
    %c0_6 = arith.constant 0 : index
    %c0_7 = arith.constant 0 : index
    %4 = vector.load %arg5[%c0_6, %c0_7] : memref<1x128xf32, #tpu.memory_space<vmem>>, vector<1x128xf32>
    %5 = vector.broadcast %4 : vector<1x128xf32> to vector<2x128xf32>
    %6 = arith.addf %3, %5 : vector<2x128xf32>
    %7 = vector.shape_cast %1 : vector<2x8x128xf32> to vector<16x128xf32>
    %c0_8 = arith.constant 0 : index
    %c0_9 = arith.constant 0 : index
    %8 = vector.load %arg4[%c0_8, %c0_9] : memref<128x128xf32, #tpu.memory_space<vmem>>, vector<128x128xf32>
    %cst_10 = arith.constant dense<0.000000e+00> : vector<16x128xf32>
    %9 = tpu.matmul %7, %8, %cst_10 {dimension_numbers = #tpu.dot_dimension_numbers<[1], [0], [0], [1], [0, 0, 1, 1], [], []>} : vector<16x128xf32>, vector<128x128xf32>, vector<16x128xf32> -> vector<16x128xf32>
    %10 = vector.shape_cast %9 : vector<16x128xf32> to vector<2x8x128xf32>
    %11 = vector.shape_cast %6 : vector<2x128xf32> to vector<2x1x128xf32>
    %12 = vector.broadcast %11 : vector<2x1x128xf32> to vector<2x8x128xf32>
    %13 = arith.addf %12, %10 : vector<2x8x128xf32>
    %14 = math.tanh %13 : vector<2x8x128xf32>
    %c0_11 = arith.constant 0 : index
    %c0_12 = arith.constant 0 : index
    %15 = vector.load %arg6[%c0_11, %c0_12] : memref<1x128xf32, #tpu.memory_space<vmem>>, vector<1x128xf32>
    %16 = vector.shape_cast %15 : vector<1x128xf32> to vector<1x1x128xf32>
    %17 = vector.broadcast %16 : vector<1x1x128xf32> to vector<2x8x128xf32>
    %18 = arith.mulf %14, %17 : vector<2x8x128xf32>
    %cst_13 = arith.constant dense<0.000000e+00> : vector<2x8xf32>
    %19 = vector.multi_reduction <add>, %18, %cst_13 [2] : vector<2x8x128xf32> to vector<2x8xf32>
    %cst_14 = arith.constant dense<0xFF800000> : vector<2xf32>
    %20 = vector.multi_reduction <maximumf>, %19, %cst_14 [1] : vector<2x8xf32> to vector<2xf32>
    %21 = vector.shape_cast %20 : vector<2xf32> to vector<2x1xf32>
    %22 = vector.broadcast %21 : vector<2x1xf32> to vector<2x8xf32>
    %23 = arith.subf %19, %22 : vector<2x8xf32>
    %24 = math.exp %23 : vector<2x8xf32>
    %cst_15 = arith.constant dense<0.000000e+00> : vector<2xf32>
    %25 = vector.multi_reduction <add>, %24, %cst_15 [1] : vector<2x8xf32> to vector<2xf32>
    %26 = vector.shape_cast %25 : vector<2xf32> to vector<2x1xf32>
    %27 = tpu.reciprocal %26 : vector<2x1xf32> -> vector<2x1xf32>
    %28 = vector.broadcast %27 : vector<2x1xf32> to vector<2x8xf32>
    %29 = arith.mulf %24, %28 : vector<2x8xf32>
    %c0_16 = arith.constant 0 : index
    %c0_17 = arith.constant 0 : index
    %30 = vector.load %arg8[%c0_16, %c0_17] : memref<2x8xf32, #tpu.memory_space<vmem>>, vector<2x8xf32>
    tpu.vector_store %arg8[%c0_16, %c0_17], %29 {strides = array<i32>} : memref<2x8xf32, #tpu.memory_space<vmem>>, vector<2x8xf32>,
    %31 = vector.shape_cast %29 : vector<2x8xf32> to vector<2x8x1xf32>
    %32 = vector.broadcast %31 : vector<2x8x1xf32> to vector<2x8x128xf32>
    %33 = arith.mulf %32, %1 : vector<2x8x128xf32>
    %cst_18 = arith.constant dense<0.000000e+00> : vector<2x128xf32>
    %34 = vector.multi_reduction <add>, %33, %cst_18 [1] : vector<2x8x128xf32> to vector<2x128xf32>
    %c0_19 = arith.constant 0 : index
    %c0_20 = arith.constant 0 : index
    %35 = vector.load %arg7[%c0_19, %c0_20] : memref<2x128xf32, #tpu.memory_space<vmem>>, vector<2x128xf32>
    tpu.vector_store %arg7[%c0_19, %c0_20], %34 {strides = array<i32>} : memref<2x128xf32, #tpu.memory_space<vmem>>, vector<2x128xf32>,
    return
  }
  func.func @transform_0(%arg0: i32) -> (i32, i32) {
    %c0_i32 = arith.constant 0 : i32
    %c0_i32_0 = arith.constant 0 : i32
    return %arg0, %c0_i32 : i32, i32
  }
  func.func @transform_1(%arg0: i32) -> (i32, i32, i32) {
    %c0_i32 = arith.constant 0 : i32
    %c0_i32_0 = arith.constant 0 : i32
    %c0_i32_1 = arith.constant 0 : i32
    return %arg0, %c0_i32, %c0_i32_0 : i32, i32, i32
  }
  func.func @transform_2(%arg0: i32) -> (i32, i32) {
    %c0_i32 = arith.constant 0 : i32
    %c0_i32_0 = arith.constant 0 : i32
    %c0_i32_1 = arith.constant 0 : i32
    return %c0_i32, %c0_i32_0 : i32, i32
  }
  func.func @transform_3(%arg0: i32) -> (i32, i32) {
    %c0_i32 = arith.constant 0 : i32
    %c0_i32_0 = arith.constant 0 : i32
    %c0_i32_1 = arith.constant 0 : i32
    return %c0_i32, %c0_i32_0 : i32, i32
  }
  func.func @transform_4(%arg0: i32) -> (i32, i32) {
    %c0_i32 = arith.constant 0 : i32
    %c0_i32_0 = arith.constant 0 : i32
    %c0_i32_1 = arith.constant 0 : i32
    return %c0_i32, %c0_i32_0 : i32, i32
  }
  func.func @transform_5(%arg0: i32) -> (i32, i32) {
    %c0_i32 = arith.constant 0 : i32
    %c0_i32_0 = arith.constant 0 : i32
    %c0_i32_1 = arith.constant 0 : i32
    return %c0_i32, %c0_i32_0 : i32, i32
  }
  func.func @transform_6(%arg0: i32) -> (i32, i32) {
    %c0_i32 = arith.constant 0 : i32
    %c0_i32_0 = arith.constant 0 : i32
    return %arg0, %c0_i32 : i32, i32
  }
  func.func @transform_7(%arg0: i32) -> (i32, i32) {
    %c0_i32 = arith.constant 0 : i32
    %c0_i32_0 = arith.constant 0 : i32
    return %arg0, %c0_i32 : i32, i32
  }
}

</mosaic_0001>

<bundles_post_ra>
// kernel: tpu_custom_call.1
= control target key start
LH: loop header
LB: loop body
LE: loop exit
PB: predicated region body
PF: predicated region fallthrough
CT: control target
= control target key end

     0   :  { %13 = vsyncpa [#allocation3], 0  ;;  %s609_s0 = inlined_call_operand.hbm [shape: f32[2,128], index: 0, kind: input, shape index: {}]   ;;  %s610_s1 = inlined_call_operand.hbm [shape: f32[2,8,128], index: 1, kind: input, shape index: {}]   ;;  %s611_s2 = inlined_call_operand.hbm [shape: f32[128,128], index: 2, kind: input, shape index: {}]   ;;  %s612_s3 = inlined_call_operand.hbm [shape: f32[128,128], index: 3, kind: input, shape index: {}]   ;;  %s613_s4 = inlined_call_operand.vmem [shape: f32[1,128], index: 4, kind: input, shape index: {}]   ;;  %s614_s5 = inlined_call_operand.vmem [shape: f32[1,128], index: 5, kind: input, shape index: {}]   ;;  %s615_s6 = inlined_call_operand.hbm [shape: f32[2,128], index: 6, kind: output, shape index: {0}]   ;;  %s616_s7 = inlined_call_operand.hbm [shape: f32[2,8], index: 7, kind: output, shape index: {1}]  }
   0x1   :  { %14 = vsyncpa [#allocation6], 0 }
   0x2   :  { %15 = vsyncpa [#allocation9], 0 }
   0x3   :  { %16 = vsyncpa [#allocation4], 0  ;;  %s33_s26 = sshll.u32 %s610_s1, 4  ;;  %s34_s26 = int_to_ptr.hbm [resolvable:$true] %s33_s26 }
   0x4   :  { %17 = vsyncpa [#allocation12], 0  ;;  %s513_s27 = smov [#allocation5]   ;;  %s23_s8 = sshll.u32 %s609_s0, 4  ;;  %s24_s8 = int_to_ptr.hbm [resolvable:$true] %s23_s8 }
   0x5   :  { %s35_s28 = sshll.u32 %s513_s27, 4  ;;  %s514_s9 = smov 128   ;;  %s36_s28 = int_to_ptr.vmem [resolvable:$true] %s35_s28 }
   0x6   :  { %s515_s10 = smov 8   ;;  %s516_s11 = smov [#allocation2]  }
   0x7   :  { %41 = dma.hbm_to_vmem [thread:$0]  %s34_s26, 256, %s36_s28, [#allocation6], %s514_s9, %s514_s9, %s515_s10  }
   0x8   :  { %s25_s12 = sshll.u32 %s516_s11, 4  ;;  %s46_s15 = sshll.u32 %s611_s2, 4  ;;  %s26_s12 = int_to_ptr.vmem [resolvable:$true] %s25_s12  ;;  %s47_s15 = int_to_ptr.hbm [resolvable:$true] %s46_s15 }
   0x9   :  { %28 = dma.hbm_to_vmem [thread:$0]  %s24_s8, 32, %s26_s12, [#allocation3]  }
   0xa   :  { %s59_s17 = sshll.u32 %s612_s3, 4  ;;  %s517_s18 = smov [#allocation7]   ;;  %s60_s17 = int_to_ptr.hbm [resolvable:$true] %s59_s17 }
   0xb   :  { %s48_s19 = sshll.u32 %s517_s18, 4  ;;  %s518_s0 = smov [#allocation8]   ;;  %s49_s19 = int_to_ptr.vmem [resolvable:$true] %s48_s19 }
   0xc   :  { %54 = dma.hbm_to_vmem [thread:$0]  %s47_s15, 2048, %s49_s19, [#allocation6], %s514_s9, %s514_s9, %s515_s10  }
   0xd   :  { %s61_s20 = sshll.u32 %s518_s0, 4  ;;  %s62_s20 = int_to_ptr.vmem [resolvable:$true] %s61_s20 }
   0xe   :  { %67 = dma.hbm_to_vmem [thread:$0]  %s60_s17, 2048, %s62_s20, [#allocation9], %s514_s9, %s514_s9, %s515_s10  }
   0xf   :  { %503 = dma.done.wait [#allocation3], 32  }
  0x10   :  { %504 = vsyncadd [#allocation3], 4294967264 }
  0x11   :  { %505 = dma.done.wait [#allocation6], 2304  }
  0x12   :  { %506 = vsyncadd [#allocation6], 4294964992 }
  0x13   :  { %507 = dma.done.wait [#allocation9], 2048  }
  0x14   :  { %508 = vsyncadd [#allocation9], 4294965248  ;;  %v106_v0 = vld [vmem:[#allocation7 + $0x78] sm:$0xff]  ;;  %v105_v2 = vld [vmem:[#allocation7 + $0x70] sm:$0xff]  ;;  %v192_v51 = vlaneseq  ;;  %vm196_vm0 = vcmask 1041409   ;;  %vm199_vm1 = vcmask 58368  }
  0x15   :  { %v146_v1 = vld [vmem:[#allocation8 + $0x78] sm:$0xff]  ;;  %111 = vmatpush.msra.mxu0 %v106_v0  ;;  %v145_v3 = vld [vmem:[#allocation8 + $0x70] sm:$0xff]  ;;  %v104_v4 = vld [vmem:[#allocation7 + $0x68] sm:$0xff]  ;;  %v519_v58 = vmov 0   ;;  %s302_s25 = sshll.u32 %s616_s7, 4  ;;  %s521_s7 = smov [#allocation10]   ;;  %s303_s25 = int_to_ptr.hbm [resolvable:$true] %s302_s25 }
  0x16   :  { %319 = vmatpush.msra.mxu2 %v146_v1  ;;  %147 = vmatpush.msra.mxu1 %v146_v1  ;;  %v144_v5 = vld [vmem:[#allocation8 + $0x68] sm:$0xff]  ;;  %v103_v6 = vld [vmem:[#allocation7 + $0x60] sm:$0xff]  ;;  %v102_v8 = vld [vmem:[#allocation7 + $0x58] sm:$0xff]  ;;  %v586_v52 = vand.u32 127, %v192_v51  ;;  %s289_s26 = sshll.u32 %s521_s7, 4  ;;  %s291_s29 = sshll.u32 %s615_s6, 4  ;;  %s290_s26 = int_to_ptr.vmem [resolvable:$true] %s289_s26  ;;  %s292_s29 = int_to_ptr.hbm [resolvable:$true] %s291_s29 }
  0x17   :  { %112 = vmatpush.msra.mxu0 %v105_v2  ;;  %v143_v7 = vld [vmem:[#allocation8 + $0x60] sm:$0xff]  ;;  %v142_v9 = vld [vmem:[#allocation8 + $0x58] sm:$0xff]  ;;  %v101_v10 = vld [vmem:[#allocation7 + $0x50] sm:$0xff]  ;;  %345 = vset.pattern.permute.xlu2 %v519_v58 }
  0x18   :  { %320 = vmatpush.msra.mxu2 %v145_v3  ;;  %148 = vmatpush.msra.mxu1 %v145_v3  ;;  %v141_v11 = vld [vmem:[#allocation8 + $0x50] sm:$0xff]  ;;  %v100_v12 = vld [vmem:[#allocation7 + $0x48] sm:$0xff]  ;;  %v99_v14 = vld [vmem:[#allocation7 + $0x40] sm:$0xff] }
  0x19   :  { %113 = vmatpush.msra.mxu0 %v104_v4  ;;  %v140_v13 = vld [vmem:[#allocation8 + $0x48] sm:$0xff]  ;;  %v139_v15 = vld [vmem:[#allocation8 + $0x40] sm:$0xff]  ;;  %v98_v16 = vld [vmem:[#allocation7 + $0x38] sm:$0xff]  ;;  %344 = vset.pattern.permute.xlu1 %v519_v58 }
  0x1a   :  { %321 = vmatpush.msra.mxu2 %v144_v5  ;;  %149 = vmatpush.msra.mxu1 %v144_v5  ;;  %v138_v17 = vld [vmem:[#allocation8 + $0x38] sm:$0xff]  ;;  %v97_v18 = vld [vmem:[#allocation7 + $0x30] sm:$0xff]  ;;  %v96_v20 = vld [vmem:[#allocation7 + $0x28] sm:$0xff] }
  0x1b   :  { %114 = vmatpush.msra.mxu0 %v103_v6  ;;  %v137_v19 = vld [vmem:[#allocation8 + $0x30] sm:$0xff]  ;;  %v136_v21 = vld [vmem:[#allocation8 + $0x28] sm:$0xff]  ;;  %v95_v22 = vld [vmem:[#allocation7 + $0x20] sm:$0xff]  ;;  %346 = vset.pattern.permute.xlu0 %v519_v58 }
  0x1c   :  { %322 = vmatpush.msra.mxu2 %v143_v7  ;;  %150 = vmatpush.msra.mxu1 %v143_v7  ;;  %v135_v23 = vld [vmem:[#allocation8 + $0x20] sm:$0xff]  ;;  %v94_v24 = vld [vmem:[#allocation7 + $0x18] sm:$0xff]  ;;  %v93_v26 = vld [vmem:[#allocation7 + $0x10] sm:$0xff] }
  0x1d   :  { %115 = vmatpush.msra.mxu0 %v102_v8  ;;  %v134_v25 = vld [vmem:[#allocation8 + $0x18] sm:$0xff]  ;;  %v133_v27 = vld [vmem:[#allocation8 + $0x10] sm:$0xff]  ;;  %v92_v28 = vld [vmem:[#allocation7 + $0x8] sm:$0xff] }
  0x1e   :  { %323 = vmatpush.msra.mxu2 %v142_v9  ;;  %151 = vmatpush.msra.mxu1 %v142_v9  ;;  %v132_v29 = vld [vmem:[#allocation8 + $0x8] sm:$0xff]  ;;  %v91_v30 = vld [vmem:[#allocation7] sm:$0xff]  ;;  %v574_v33 = vld [vmem:[#allocation5 + $0x8] sm:$0xff] }
  0x1f   :  { %116 = vmatpush.msra.mxu0 %v101_v10  ;;  %v131_v31 = vld [vmem:[#allocation8] sm:$0xff]  ;;  %v88_v32 = vld [vmem:[#allocation2] sm:$0x3]  ;;  %v576_v34 = vld [vmem:[#allocation5] sm:$0xff] }
  0x20   :  { %324 = vmatpush.msra.mxu2 %v141_v11  ;;  %152 = vmatpush.msra.mxu1 %v141_v11  ;;  %v347_v35 = vld [vmem:[%s613_s4] ss:$0 sm:$0xff]  ;;  %s520_s4 = smov [#allocation11]  }
  0x21   :  { %117 = vmatpush.msra.mxu0 %v100_v12  ;;  %v348_v45 = vld [vmem:[%s614_s5] ss:$0 sm:$0xff]  ;;  %s300_s5 = sshll.u32 %s520_s4, 4  ;;  %s301_s5 = int_to_ptr.vmem [resolvable:$true] %s300_s5 }
  0x22   :  { %325 = vmatpush.msra.mxu2 %v140_v13  ;;  %153 = vmatpush.msra.mxu1 %v140_v13 }
  0x23   :  { %118 = vmatpush.msra.mxu0 %v99_v14 }
  0x24   :  { %326 = vmatpush.msra.mxu2 %v139_v15  ;;  %154 = vmatpush.msra.mxu1 %v139_v15 }
  0x25   :  { %119 = vmatpush.msra.mxu0 %v98_v16 }
  0x26   :  { %327 = vmatpush.msra.mxu2 %v138_v17  ;;  %155 = vmatpush.msra.mxu1 %v138_v17 }
  0x27   :  { %120 = vmatpush.msra.mxu0 %v97_v18 }
  0x28   :  { %328 = vmatpush.msra.mxu2 %v137_v19  ;;  %156 = vmatpush.msra.mxu1 %v137_v19 }
  0x29   :  { %121 = vmatpush.msra.mxu0 %v96_v20 }
  0x2a   :  { %329 = vmatpush.msra.mxu2 %v136_v21  ;;  %157 = vmatpush.msra.mxu1 %v136_v21 }
  0x2b   :  { %122 = vmatpush.msra.mxu0 %v95_v22 }
  0x2c   :  { %330 = vmatpush.msra.mxu2 %v135_v23  ;;  %158 = vmatpush.msra.mxu1 %v135_v23 }
  0x2d   :  { %123 = vmatpush.msra.mxu0 %v94_v24 }
  0x2e   :  { %331 = vmatpush.msra.mxu2 %v134_v25  ;;  %159 = vmatpush.msra.mxu1 %v134_v25 }
  0x2f   :  { %124 = vmatpush.msra.mxu0 %v93_v26 }
  0x30   :  { %332 = vmatpush.msra.mxu2 %v133_v27  ;;  %160 = vmatpush.msra.mxu1 %v133_v27 }
  0x31   :  { %125 = vmatpush.msra.mxu0 %v92_v28 }
  0x32   :  { %333 = vmatpush.msra.mxu2 %v132_v29  ;;  %161 = vmatpush.msra.mxu1 %v132_v29 }
  0x33   :  { %126 = vmatpush.msra.mxu0 %v91_v30 }
  0x34   :  { %334 = vmatpush.msra.mxu2 %v131_v31  ;;  %127 = vmatmul.f32.vlgmr.msra.gmra.mxu0 %v88_v32 }
  0x35   :  { %166 = vmatmul.f32.vlgmr.msra.gmra.mxu2 %v574_v33  ;;  %162 = vmatpush.msra.mxu1 %v131_v31 }
  0x36   :  { %163 = vmatmul.f32.vlgmr.msra.gmra.mxu1 %v576_v34 }
  0xb1   :  { %v128_v36 = vpop.f32.mrf.mxu0 }
  0xb2   :  { %v129_v37 = vadd.f32 %v347_v35, %v128_v36 }
  0xb3   :  { %v164_v38 = vpop.f32.mrf.mxu1 }
  0xb4   :  { %v171_v39 = vrot.slane %v129_v37, 1  ;;  %v172_v40 = vperm.slane %v129_v37, 0 }
  0xb6   :  { %v176_v41 = vadd.f32 %v172_v40, %v164_v38  ;;  %v173_v42 = vperm.slane %v171_v39, 0 }
  0xb8   :  { %v167_v43 = vpop.f32.mrf.mxu2  ;;  %349 = vtanh.f32 %v176_v41 }
  0xb9   :  { %v177_v44 = vadd.f32 %v173_v42, %v167_v43 }
  0xbb   :  { %351 = vtanh.f32 %v177_v44 }
  0xbe   :  { %v350_v46 = vpop.eup %349 }
  0xbf   :  { %v184_v47 = vmul.f32 %v350_v46, %v348_v45 }
  0xc1   :  { %186 = vadd.xlane.f32.xlu0 %v184_v47  ;;  %v352_v48 = vpop.eup %351 }
  0xc2   :  { %v185_v49 = vmul.f32 %v352_v48, %v348_v45 }
  0xc9   :  { %188 = vadd.xlane.f32.xlu0 %v185_v49 }
 0x134   :  { %v187_v50 = vpop.xlane.xlu0 %186 }
 0x135   :  { %v194_v54 = vperm.slane %v187_v50, %v586_v52 }
 0x13c   :  { %v189_v53 = vpop.xlane.xlu0 %188 }
 0x13d   :  { %v195_v55 = vperm.slane %v189_v53, %v586_v52 }
 0x13f   :  { %v197_v56 = vsel %vm196_vm0, %v195_v55, %v194_v54 }
 0x140   :  { %v200_v57 = vsel %vm199_vm1, %v197_v56, -inf }
 0x141   :  { %201 = vmax.xlane.f32.xlu1 %v200_v57 }
 0x1b4   :  { %v202_v59 = vpop.xlane.xlu1 %201 }
 0x1b5   :  { %v204_v60 = vperm.slane %v202_v59, 0  ;;  %v205_v61 = vperm.slane %v202_v59, 1 }
 0x1b7   :  { %v208_v62 = vsub.f32 %v187_v50, %v204_v60  ;;  %v209_v63 = vsub.f32 %v189_v53, %v205_v61 }
 0x1b9   :  { %v210_v0 = vmul.f32 1.442695, %v208_v62  ;;  %v212_v1 = vmul.f32 1.442695, %v209_v63 }
 0x1bb   :  { %353 = vpow2.f32 %v210_v0 }
 0x1bc   :  { %355 = vpow2.f32 %v212_v1 }
 0x1c1   :  { %v354_v2 = vpop.eup %353 }
 0x1c2   :  { %v356_v3 = vpop.eup %355  ;;  %217 = vperm.xlu1 %344, %v354_v2  }
 0x1c3   :  { %220 = vperm.xlu2 %345, %v356_v3  }
 0x21d   :  { %v221_v4 = vpop.permute.xlu2 %220 }
 0x21e   :  { %v223_v6 = vperm.slane %v221_v4, %v586_v52 }
 0x234   :  { %v218_v5 = vpop.permute.xlu1 %217 }
 0x235   :  { %v222_v7 = vperm.slane %v218_v5, %v586_v52 }
 0x237   :  { %v224_v8 = vsel %vm196_vm0, %v223_v6, %v222_v7 }
 0x238   :  { %v226_v9 = vsel %vm199_vm1, %v224_v8, 0.0 }
 0x239   :  { %227 = vadd.xlane.f32.xlu2 %v226_v9 }
 0x2ac   :  { %v228_v10 = vpop.xlane.xlu2 %227 }
 0x2ad   :  { %357 = vrcp.f32 %v228_v10  ;;  %v240_v14 = vand.u32 2147483648, %v228_v10  ;;  %v238_v16 = vand.u32 2147483647, %v228_v10  ;;  %vm234_vm3 = vweird.f32 %v228_v10 }
 0x2af   :  { %v241_v18 = vor.u32 1.1754944e-38, %v240_v14  ;;  %vm239_vm5 = vcmp.eq.f32.partialorder %v238_v16, 8.507059e+37 }
 0x2b3   :  { %v358_v11 = vpop.eup %357 }
 0x2b4   :  { %v230_v12 = vmul.f32 %v358_v11, %v228_v10  ;;  %vm235_vm2 = vweird.f32 %v358_v11 }
 0x2b5   :  { %vm236_vm4 = vmor %vm234_vm3, %vm235_vm2 }
 0x2b6   :  { %v231_v13 = vsub.f32 1.0, %v230_v12 }
 0x2b8   :  { %v232_v15 = vmul.f32 %v358_v11, %v231_v13 }
 0x2ba   :  { %v233_v17 = vadd.f32 %v358_v11, %v232_v15 }
 0x2bc   :  { %v237_v19 = vsel %vm236_vm4, %v358_v11, %v233_v17 }
 0x2bd   :  { %v242_v20 = vsel %vm239_vm5, %v241_v18, %v237_v19 }
 0x2be   :  { %v245_v21 = vperm.slane %v242_v20, 1  ;;  %v244_v22 = vperm.slane %v242_v20, 0 }
 0x2c0   :  { %v249_v23 = vmul.f32 %v356_v3, %v245_v21  ;;  %v248_v24 = vmul.f32 %v354_v2, %v244_v22 }
 0x2c2   :  { %256 = vperm.xlu1 %344, %v249_v23   ;;  %253 = vperm.xlu0 %346, %v248_v24  }
 0x334   :  { %v257_v25 = vpop.permute.xlu1 %256  ;;  %v254_v26 = vpop.permute.xlu0 %253 }
 0x335   :  { %v259_v27 = vperm.slane %v257_v25, %v586_v52  ;;  %v266_v28 = vmul.f32 %v257_v25, %v574_v33  ;;  %v258_v29 = vperm.slane %v254_v26, %v586_v52  ;;  %v265_v30 = vmul.f32 %v254_v26, %v576_v34 }
 0x337   :  { %v273_v31 = vrot.slane %v266_v28, 4  ;;  %v260_v32 = vsel %vm196_vm0, %v259_v27, %v258_v29  ;;  %v267_v35 = vrot.slane %v265_v30, 4 }
 0x338   :  { %262 = vst.msk [vmem:[#allocation11] sm:$0x3] %vm199_vm1, %v260_v32 }
 0x339   :  { %v274_v36 = vadd.f32 %v273_v31, %v266_v28  ;;  %v268_v37 = vadd.f32 %v267_v35, %v265_v30  ;;  %305 = dma.vmem_to_hbm [thread:$0]  %s301_s5, 32, %s303_s25, [#allocation12]  }
 0x33b   :  { %v275_v38 = vrot.slane %v274_v36, 2  ;;  %v269_v39 = vrot.slane %v268_v37, 2 }
 0x33d   :  { %v276_v40 = vadd.f32 %v275_v38, %v274_v36  ;;  %v270_v41 = vadd.f32 %v269_v39, %v268_v37 }
 0x33f   :  { %v277_v33 = vrot.slane %v276_v40, 1  ;;  %v271_v42 = vrot.slane %v270_v41, 1 }
 0x341   :  { %v278_v34 = vadd.f32 %v277_v33, %v276_v40  ;;  %v272_v43 = vadd.f32 %v271_v42, %v270_v41 }
 0x343   :  { %v281_v44 = vsel %vm196_vm0, %v278_v34, %v272_v43 }
 0x344   :  { %283 = vst [vmem:[#allocation10] sm:$0x3] %v281_v44 }
 0x345   :  { %294 = dma.vmem_to_hbm [thread:$0]  %s290_s26, 32, %s292_s29, [#allocation4]  }
 0x346   :  { %509 = dma.done.wait [#allocation4], 32  }
 0x347   :  { %510 = vsyncadd [#allocation4], 4294967264 }
 0x348   :  { %511 = dma.done.wait [#allocation12], 32  }
 0x349   :  { %512 = vsyncadd [#allocation12], 4294967264 }
 0x34a   :  { %314 = vsyncpa [#allocation3], 1 }
 0x34b   :  { %315 = vsyncpa [#allocation6], 1 }
 0x34c   :  { %316 = vsyncpa [#allocation9], 1 }
 0x34d   :  { %317 = vsyncpa [#allocation4], 1 }
 0x34e   :  { %318 = vsyncpa [#allocation12], 1 }

</bundles_post_ra>
